<compile_context>
chip_gen: v7x
topology: tpu7x:2x2x1
jax: 0.10.0
libtpu: 0.0.40
codegen_flags: <defaults>
</compile_context>

<pallas_src>
import math
import functools

import jax
import jax.numpy as jnp
from jax.experimental import pallas as pl
from jax.experimental.pallas import tpu as pltpu


M_MARGIN = 4            # module default m=4 -> cos(4*theta) = 8c^4 - 8c^2 + 1
PI_CONST = 3.14159265   # constant used verbatim in the PyTorch module
_EPS = 1e-12            # F.normalize default eps


def _round_up(n, m):
    return ((n + m - 1) // m) * m


def _sphere_kernel(x_ref, w_ref, invwn_ref, label_ref, inv1pl_ref, out_ref, *, tn):
    j = pl.program_id(1)

    x = x_ref[...].astype(jnp.float32)          # (TM, D)
    w = w_ref[...].astype(jnp.float32)          # (TN, D)
    inv_wn = invwn_ref[...]                     # (1, TN)  f32  (precomputed 1/max(||w||, eps))
    lbl = label_ref[...]                        # (TM, 1)  int32
    inv_1p_lamb = inv1pl_ref[0, 0]              # scalar f32 from SMEM: 1/(1+lamb)

    # Per-row ||x|| and 1/||x|| (rsqrt -> EUP slot).
    sum_sq = jnp.sum(x * x, axis=1, keepdims=True)              # (TM, 1)
    x_norm = jnp.sqrt(sum_sq)                                   # torch.norm(input, 2, 1)
    inv_x_norm = jax.lax.rsqrt(jnp.maximum(sum_sq, _EPS * _EPS))  # == 1/max(||x||, eps)

    # raw = x @ W^T on the MXU; contracting dims (1,1) -> no materialized transpose.
    raw = jax.lax.dot_general(
        x, w,
        dimension_numbers=(((1,), (1,)), ((), ())),
        preferred_element_type=jnp.float32,
    )                                                           # (TM, TN)

    # cos_theta via rank-1 scaling of the matmul result.
    cos_theta = jnp.clip(raw * inv_x_norm * inv_wn, -1.0, 1.0)

    # One-hot for the label columns that fall inside this class tile.
    col = j * tn + jax.lax.broadcasted_iota(jnp.int32, cos_theta.shape, 1)
    one_hot = (col == lbl).astype(jnp.float32)                  # (TM, TN)

    # Gather cos(theta) at the label column (zero if the label is not in this tile;
    # in that case the delta below is masked out by one_hot anyway).
    c_lbl = jnp.sum(one_hot * cos_theta, axis=1, keepdims=True)  # (TM, 1)

    # Margin math on the (TM, 1) label column only.
    c2 = c_lbl * c_lbl
    cos_m_theta = 8.0 * c2 * c2 - 8.0 * c2 + 1.0                 # mlambda[4]

    # k = floor(m*acos(c)/pi) via monotone thresholds; sign = (-1)^k accumulated directly.
    k = jnp.zeros_like(c_lbl)
    sign = jnp.ones_like(c_lbl)
    for step in range(1, M_MARGIN + 1):
        thr = math.cos(step * PI_CONST / M_MARGIN)
        le = (c_lbl <= thr).astype(jnp.float32)
        k = k + le
        sign = sign * (1.0 - 2.0 * le)

    phi_theta = sign * cos_m_theta - 2.0 * k                     # (TM, 1)
    delta = (phi_theta - c_lbl) * inv_1p_lamb                    # (TM, 1)

    out = (cos_theta + one_hot * delta) * x_norm
    out_ref[...] = out.astype(out_ref.dtype)


def sphere_product(x, weight, label, *, it=1):
    """x: (B, D) f32, weight: (C, D) f32, label: (B,) int32 -> (B, C) f32."""
    B, D = x.shape
    C, _ = weight.shape

    # lamb for this call (module increments self.iter before use; first call -> iter=1).
    base, gamma, power, lambda_min = 1000.0, 0.12, 1, 5.0
    lamb = max(lambda_min, base * (1.0 + gamma * it) ** (-power))
    inv_1p_lamb = jnp.full((1, 1), 1.0 / (1.0 + lamb), dtype=jnp.float32)  # runtime SMEM scalar

    # Tile sizes: sublane-aligned TM, lane-dense TN (multiple of 128).
    TM = min(256, _round_up(B, 8))
    TN = min(512, _round_up(C, 128))
    Bp = _round_up(B, TM)
    Cp = _round_up(C, TN)

    # Pad inputs (zero rows produce zero output rows/cols; sliced away below).
    x_p = jnp.zeros((Bp, D), jnp.float32).at[:B, :].set(x.astype(jnp.float32))
    w_p = jnp.zeros((Cp, D), jnp.float32).at[:C, :].set(weight.astype(jnp.float32))
    label_p = jnp.zeros((Bp, 1), jnp.int32).at[:B, 0].set(label.astype(jnp.int32))

    # Precompute 1/max(||w_c||, eps) once (shared by every batch tile), lane-oriented (1, Cp).
    w_sq = jnp.sum(w_p * w_p, axis=1)
    inv_w_norm = jax.lax.rsqrt(jnp.maximum(w_sq, _EPS * _EPS)).reshape(1, Cp)

    kernel = functools.partial(_sphere_kernel, tn=TN)

    out_p = pl.pallas_call(
        kernel,
        out_shape=jax.ShapeDtypeStruct((Bp, Cp), jnp.float32),
        grid=(Bp // TM, Cp // TN),
        in_specs=[
            pl.BlockSpec((TM, D), lambda i, j: (i, 0)),    # x tile
            pl.BlockSpec((TN, D), lambda i, j: (j, 0)),    # W tile
            pl.BlockSpec((1, TN), lambda i, j: (0, j)),    # 1/||w|| tile (lane-oriented)
            pl.BlockSpec((TM, 1), lambda i, j: (i, 0)),    # labels for this batch tile
            pl.BlockSpec(memory_space=pltpu.MemorySpace.SMEM),  # 1/(1+lamb) scalar
        ],
        out_specs=pl.BlockSpec((TM, TN), lambda i, j: (i, j)),
        compiler_params=pltpu.CompilerParams(
            dimension_semantics=("parallel", "parallel"),
        ),
    )(x_p, w_p, inv_w_norm, label_p, inv_1p_lamb)

    return out_p[:B, :C]


def _reference(x, weight, label, *, it=1):
    """Pure-JAX reference mirroring the PyTorch forward (for a sanity check)."""
    base, gamma, power, lambda_min = 1000.0, 0.12, 1, 5.0
    lamb = max(lambda_min, base * (1.0 + gamma * it) ** (-power))
    eps = 1e-12
    xn = x / jnp.maximum(jnp.linalg.norm(x, axis=1, keepdims=True), eps)
    wn = weight / jnp.maximum(jnp.linalg.norm(weight, axis=1, keepdims=True), eps)
    c = jnp.clip(xn @ wn.T, -1.0, 1.0)
    cm = 8.0 * c**4 - 8.0 * c**2 + 1.0
    theta = jnp.arccos(c)
    k = jnp.floor(M_MARGIN * theta / PI_CONST)
    phi = (-1.0) ** k * cm - 2.0 * k
    norm_f = jnp.linalg.norm(x, axis=1, keepdims=True)
    one_hot = jax.nn.one_hot(label, weight.shape[0], dtype=jnp.float32)
    out = one_hot * (phi - c) / (1.0 + lamb) + c
    return out * norm_f


if __name__ == "__main__":
    key = jax.random.PRNGKey(0)
    B, D, C = 8, 32, 16   # batch, in_features, out_features

    k_x, k_w, k_l = jax.random.split(key, 3)
    x = jax.random.normal(k_x, (B, D), dtype=jnp.float32)

    # Deterministic xavier_uniform-style init for weight (out_features, in_features).
    bound = math.sqrt(6.0 / (D + C))
    weight = jax.random.uniform(k_w, (C, D), minval=-bound, maxval=bound,
                                dtype=jnp.float32)

    label = jax.random.randint(k_l, (B,), 0, C, dtype=jnp.int32)

    out = sphere_product(x, weight, label, it=1)
    out = jax.block_until_ready(out)

    ref = _reference(x, weight, label, it=1)
    assert out.shape == (B, C)
    assert jnp.allclose(out, ref, atol=1e-4, rtol=1e-4), (out, ref)

    print("KERNEL_OK")
</pallas_src>

<mosaic_0001>
module attributes {stable_mosaic.version = 11 : i64} {
  func.func @_sphere_kernel(%arg0: i32, %arg1: i32, %arg2: memref<8x32xf32, #tpu.memory_space<vmem>>, %arg3: memref<128x32xf32, #tpu.memory_space<vmem>>, %arg4: memref<1x128xf32, #tpu.memory_space<vmem>>, %arg5: memref<8x1xi32, #tpu.memory_space<vmem>>, %arg6: memref<1x1xf32, #tpu.memory_space<smem>>, %arg7: memref<8x128xf32, #tpu.memory_space<vmem>>) attributes {dimension_semantics = [#tpu.dimension_semantics<parallel>, #tpu.dimension_semantics<parallel>], iteration_bounds = array<i64: 1, 1>, scalar_prefetch = 0 : i64, scratch_operands = 0 : i64, tpu.core_type = #tpu.core_type<tc>, window_params = [{transform_indices = @transform_0, window_bounds = array<i64: 8, 32>}, {transform_indices = @transform_1, window_bounds = array<i64: 128, 32>}, {transform_indices = @transform_2, window_bounds = array<i64: 1, 128>}, {transform_indices = @transform_3, window_bounds = array<i64: 8, 1>}, {transform_indices = @transform_4, window_bounds = array<i64: 1, 1>}, {transform_indices = @transform_5, window_bounds = array<i64: 8, 128>}]} {
    %c0 = arith.constant 0 : index
    %c0_0 = arith.constant 0 : index
    %0 = vector.load %arg2[%c0, %c0_0] : memref<8x32xf32, #tpu.memory_space<vmem>>, vector<8x32xf32>
    %c0_1 = arith.constant 0 : index
    %c0_2 = arith.constant 0 : index
    %1 = vector.load %arg3[%c0_1, %c0_2] : memref<128x32xf32, #tpu.memory_space<vmem>>, vector<128x32xf32>
    %c0_3 = arith.constant 0 : index
    %c0_4 = arith.constant 0 : index
    %2 = vector.load %arg4[%c0_3, %c0_4] : memref<1x128xf32, #tpu.memory_space<vmem>>, vector<1x128xf32>
    %c0_5 = arith.constant 0 : index
    %c0_6 = arith.constant 0 : index
    %3 = vector.load %arg5[%c0_5, %c0_6] : memref<8x1xi32, #tpu.memory_space<vmem>>, vector<8x1xi32>
    %c0_7 = arith.constant 0 : index
    %c0_8 = arith.constant 0 : index
    %4 = memref.load %arg6[%c0_7, %c0_8] : memref<1x1xf32, #tpu.memory_space<smem>>
    %5 = arith.mulf %0, %0 : vector<8x32xf32>
    %cst = arith.constant dense<0.000000e+00> : vector<8xf32>
    %6 = vector.multi_reduction <add>, %5, %cst [1] : vector<8x32xf32> to vector<8xf32>
    %7 = vector.shape_cast %6 : vector<8xf32> to vector<8x1xf32>
    %8 = math.sqrt %7 : vector<8x1xf32>
    %cst_9 = arith.constant 1.000000e-24 : f32
    %9 = vector.broadcast %cst_9 : f32 to vector<8x1xf32>
    %10 = arith.maximumf %7, %9 : vector<8x1xf32>
    %11 = math.rsqrt %10 : vector<8x1xf32>
    %cst_10 = arith.constant dense<0.000000e+00> : vector<8x128xf32>
    %12 = tpu.matmul %0, %1, %cst_10 {dimension_numbers = #tpu.dot_dimension_numbers<[1], [1], [0], [0], [0, 0, 1, 0], [], []>} : vector<8x32xf32>, vector<128x32xf32>, vector<8x128xf32> -> vector<8x128xf32>
    %13 = vector.broadcast %11 : vector<8x1xf32> to vector<8x128xf32>
    %14 = arith.mulf %12, %13 : vector<8x128xf32>
    %15 = vector.broadcast %2 : vector<1x128xf32> to vector<8x128xf32>
    %16 = arith.mulf %14, %15 : vector<8x128xf32>
    %cst_11 = arith.constant -1.000000e+00 : f32
    %cst_12 = arith.constant 1.000000e+00 : f32
    %17 = vector.broadcast %cst_11 : f32 to vector<8x128xf32>
    %18 = arith.maximumf %17, %16 : vector<8x128xf32>
    %19 = vector.broadcast %cst_12 : f32 to vector<8x128xf32>
    %20 = arith.minimumf %19, %18 : vector<8x128xf32>
    %c128_i32 = arith.constant 128 : i32
    %21 = arith.muli %arg1, %c128_i32 : i32
    %22 = tpu.iota {dimensions = array<i32: 1>} : vector<8x128xi32>
    %23 = vector.broadcast %21 : i32 to vector<8x128xi32>
    %24 = arith.addi %23, %22 : vector<8x128xi32>
    %25 = vector.broadcast %3 : vector<8x1xi32> to vector<8x128xi32>
    %26 = arith.cmpi eq, %24, %25 : vector<8x128xi32>
    %27 = arith.extui %26 : vector<8x128xi1> to vector<8x128xi32>
    %28 = arith.sitofp %27 : vector<8x128xi32> to vector<8x128xf32>
    %29 = arith.mulf %28, %20 : vector<8x128xf32>
    %cst_13 = arith.constant dense<0.000000e+00> : vector<8xf32>
    %30 = vector.multi_reduction <add>, %29, %cst_13 [1] : vector<8x128xf32> to vector<8xf32>
    %31 = vector.shape_cast %30 : vector<8xf32> to vector<8x1xf32>
    %32 = arith.mulf %31, %31 : vector<8x1xf32>
    %cst_14 = arith.constant 8.000000e+00 : f32
    %33 = vector.broadcast %cst_14 : f32 to vector<8x1xf32>
    %34 = arith.mulf %33, %32 : vector<8x1xf32>
    %35 = arith.mulf %34, %32 : vector<8x1xf32>
    %cst_15 = arith.constant 8.000000e+00 : f32
    %36 = vector.broadcast %cst_15 : f32 to vector<8x1xf32>
    %37 = arith.mulf %36, %32 : vector<8x1xf32>
    %38 = arith.subf %35, %37 : vector<8x1xf32>
    %cst_16 = arith.constant 1.000000e+00 : f32
    %39 = vector.broadcast %cst_16 : f32 to vector<8x1xf32>
    %40 = arith.addf %38, %39 : vector<8x1xf32>
    %cst_17 = arith.constant 0.000000e+00 : f32
    %41 = vector.broadcast %cst_17 : f32 to vector<8x1xf32>
    %cst_18 = arith.constant 1.000000e+00 : f32
    %42 = vector.broadcast %cst_18 : f32 to vector<8x1xf32>
    %cst_19 = arith.constant 0.707106769 : f32
    %43 = vector.broadcast %cst_19 : f32 to vector<8x1xf32>
    %44 = arith.cmpf ole, %31, %43 : vector<8x1xf32>
    %45 = arith.extui %44 : vector<8x1xi1> to vector<8x1xi32>
    %46 = arith.sitofp %45 : vector<8x1xi32> to vector<8x1xf32>
    %47 = arith.addf %41, %46 : vector<8x1xf32>
    %cst_20 = arith.constant 2.000000e+00 : f32
    %48 = vector.broadcast %cst_20 : f32 to vector<8x1xf32>
    %49 = arith.mulf %48, %46 : vector<8x1xf32>
    %cst_21 = arith.constant 1.000000e+00 : f32
    %50 = vector.broadcast %cst_21 : f32 to vector<8x1xf32>
    %51 = arith.subf %50, %49 : vector<8x1xf32>
    %52 = arith.mulf %42, %51 : vector<8x1xf32>
    %cst_22 = arith.constant 1.79489656E-9 : f32
    %53 = vector.broadcast %cst_22 : f32 to vector<8x1xf32>
    %54 = arith.cmpf ole, %31, %53 : vector<8x1xf32>
    %55 = arith.extui %54 : vector<8x1xi1> to vector<8x1xi32>
    %56 = arith.sitofp %55 : vector<8x1xi32> to vector<8x1xf32>
    %57 = arith.addf %47, %56 : vector<8x1xf32>
    %cst_23 = arith.constant 2.000000e+00 : f32
    %58 = vector.broadcast %cst_23 : f32 to vector<8x1xf32>
    %59 = arith.mulf %58, %56 : vector<8x1xf32>
    %cst_24 = arith.constant 1.000000e+00 : f32
    %60 = vector.broadcast %cst_24 : f32 to vector<8x1xf32>
    %61 = arith.subf %60, %59 : vector<8x1xf32>
    %62 = arith.mulf %52, %61 : vector<8x1xf32>
    %cst_25 = arith.constant -0.707106769 : f32
    %63 = vector.broadcast %cst_25 : f32 to vector<8x1xf32>
    %64 = arith.cmpf ole, %31, %63 : vector<8x1xf32>
    %65 = arith.extui %64 : vector<8x1xi1> to vector<8x1xi32>
    %66 = arith.sitofp %65 : vector<8x1xi32> to vector<8x1xf32>
    %67 = arith.addf %57, %66 : vector<8x1xf32>
    %cst_26 = arith.constant 2.000000e+00 : f32
    %68 = vector.broadcast %cst_26 : f32 to vector<8x1xf32>
    %69 = arith.mulf %68, %66 : vector<8x1xf32>
    %cst_27 = arith.constant 1.000000e+00 : f32
    %70 = vector.broadcast %cst_27 : f32 to vector<8x1xf32>
    %71 = arith.subf %70, %69 : vector<8x1xf32>
    %72 = arith.mulf %62, %71 : vector<8x1xf32>
    %cst_28 = arith.constant -1.000000e+00 : f32
    %73 = vector.broadcast %cst_28 : f32 to vector<8x1xf32>
    %74 = arith.cmpf ole, %31, %73 : vector<8x1xf32>
    %75 = arith.extui %74 : vector<8x1xi1> to vector<8x1xi32>
    %76 = arith.sitofp %75 : vector<8x1xi32> to vector<8x1xf32>
    %77 = arith.addf %67, %76 : vector<8x1xf32>
    %cst_29 = arith.constant 2.000000e+00 : f32
    %78 = vector.broadcast %cst_29 : f32 to vector<8x1xf32>
    %79 = arith.mulf %78, %76 : vector<8x1xf32>
    %cst_30 = arith.constant 1.000000e+00 : f32
    %80 = vector.broadcast %cst_30 : f32 to vector<8x1xf32>
    %81 = arith.subf %80, %79 : vector<8x1xf32>
    %82 = arith.mulf %72, %81 : vector<8x1xf32>
    %83 = arith.mulf %82, %40 : vector<8x1xf32>
    %cst_31 = arith.constant 2.000000e+00 : f32
    %84 = vector.broadcast %cst_31 : f32 to vector<8x1xf32>
    %85 = arith.mulf %84, %77 : vector<8x1xf32>
    %86 = arith.subf %83, %85 : vector<8x1xf32>
    %87 = arith.subf %86, %31 : vector<8x1xf32>
    %88 = vector.broadcast %4 : f32 to vector<8x1xf32>
    %89 = arith.mulf %87, %88 : vector<8x1xf32>
    %90 = vector.broadcast %89 : vector<8x1xf32> to vector<8x128xf32>
    %91 = arith.mulf %28, %90 : vector<8x128xf32>
    %92 = arith.addf %20, %91 : vector<8x128xf32>
    %93 = vector.broadcast %8 : vector<8x1xf32> to vector<8x128xf32>
    %94 = arith.mulf %92, %93 : vector<8x128xf32>
    %c0_32 = arith.constant 0 : index
    %c0_33 = arith.constant 0 : index
    %95 = vector.load %arg7[%c0_32, %c0_33] : memref<8x128xf32, #tpu.memory_space<vmem>>, vector<8x128xf32>
    tpu.vector_store %arg7[%c0_32, %c0_33], %94 {strides = array<i32>} : memref<8x128xf32, #tpu.memory_space<vmem>>, vector<8x128xf32>,
    return
  }
  func.func @transform_0(%arg0: i32, %arg1: i32) -> (i32, i32) {
    %c0_i32 = arith.constant 0 : i32
    %c0_i32_0 = arith.constant 0 : i32
    return %arg0, %c0_i32 : i32, i32
  }
  func.func @transform_1(%arg0: i32, %arg1: i32) -> (i32, i32) {
    %c0_i32 = arith.constant 0 : i32
    %c0_i32_0 = arith.constant 0 : i32
    return %arg1, %c0_i32 : i32, i32
  }
  func.func @transform_2(%arg0: i32, %arg1: i32) -> (i32, i32) {
    %c0_i32 = arith.constant 0 : i32
    %c0_i32_0 = arith.constant 0 : i32
    return %c0_i32, %arg1 : i32, i32
  }
  func.func @transform_3(%arg0: i32, %arg1: i32) -> (i32, i32) {
    %c0_i32 = arith.constant 0 : i32
    %c0_i32_0 = arith.constant 0 : i32
    return %arg0, %c0_i32 : i32, i32
  }
  func.func @transform_4(%arg0: i32, %arg1: i32) -> (i32, i32) {
    %c0_i32 = arith.constant 0 : i32
    %c0_i32_0 = arith.constant 0 : i32
    %c0_i32_1 = arith.constant 0 : i32
    return %c0_i32, %c0_i32_0 : i32, i32
  }
  func.func @transform_5(%arg0: i32, %arg1: i32) -> (i32, i32) {
    %c0_i32 = arith.constant 0 : i32
    return %arg0, %arg1 : i32, i32
  }
}

</mosaic_0001>

<bundles_post_ra>
// kernel: tpu_custom_call.1
= control target key start
LH: loop header
LB: loop body
LE: loop exit
PB: predicated region body
PF: predicated region fallthrough
CT: control target
= control target key end

     0   :  { %vm43_vm0 = vcmask 261120   ;;  %v399_v2 = vmov 0.0|0.0   ;;  %vm400_vm2 = vmmov 0   ;;  %v401_v5 = vmov 0.0   ;;  %s545_s0 = inlined_call_operand.vmem [shape: f32[8,32], index: 0, kind: input, shape index: {}]   ;;  %s546_s1 = inlined_call_operand.vmem [shape: f32[128,32], index: 1, kind: input, shape index: {}]   ;;  %s547_s2 = inlined_call_operand.vmem [shape: f32[1,128], index: 2, kind: input, shape index: {}]   ;;  %s548_s3 = inlined_call_operand.vmem [shape: s32[8,1], index: 3, kind: input, shape index: {}]   ;;  %s549_s4 = inlined_call_operand.<no memory space> [shape: f32[1,1], index: 4, kind: input, shape index: {}]   ;;  %s550_s5 = inlined_call_operand.hbm [shape: f32[8,128], index: 5, kind: output, shape index: {}]  }
   0x1   :  { %v23_v0 = vld [vmem:[%s546_s1] sm:$0xff]  ;;  %v24_v1 = vld [vmem:[%s546_s1 + $0x8] sm:$0xff]  ;;  %333 = vmatprep.subr.bf16.mxu0 %v399_v2  ;;  %vm442_vm1 = vmpackc.low %vm43_vm0, %vm43_vm0  ;;  %330 = vmatprep.mubr.msk.f32.mxu0 %vm400_vm2, %v401_v5  ;;  %v402_v6 = vmov 0  }
   0x2   :  { %v334_v3 = vpack.c.bf16 %v24_v1, %v23_v0  ;;  %370 = vset.pattern.permute.xlu0 %v402_v6  ;;  %v25_v7 = vld [vmem:[%s546_s1 + $0x10] sm:$0xff]  ;;  %v26_v8 = vld [vmem:[%s546_s1 + $0x18] sm:$0xff]  ;;  %v22_v9 = vld [vmem:[%s545_s0] sm:$0xff] }
   0x3   :  { %v42_v10 = vmul.f32 %v22_v9, %v22_v9 }
   0x4   :  { %336 = vmatpush3.bf16.xpose.msk.msra.mxu0 %vm442_vm1, %v334_v3 }
   0x5   :  { %337 = vmatprep.subr.bf16.mxu0 %v399_v2 }
   0x6   :  { %11 = vsyncpa [#allocation4], 0  ;;  %v338_v11 = vpack.c.bf16 %v26_v8, %v25_v7  ;;  %v44_v12 = vsel %vm43_vm0, %v42_v10, 0.0  ;;  %v27_v13 = vld [vmem:[%s546_s1 + $0x20] sm:$0xff]  ;;  %v28_v14 = vld [vmem:[%s546_s1 + $0x28] sm:$0xff]  ;;  %v188_v34 = vlaneseq  ;;  %s403_s29 = smov [#allocation3]  }
   0x7   :  { %45 = vadd.xlane.f32.xlu0 %v44_v12  ;;  %v342_v15 = vpack.c.bf16 %v28_v14, %v27_v13  ;;  %v29_v16 = vld [vmem:[%s546_s1 + $0x30] sm:$0xff]  ;;  %v30_v17 = vld [vmem:[%s546_s1 + $0x38] sm:$0xff]  ;;  %v31_v19 = vld [vmem:[%s546_s1 + $0x40] sm:$0xff]  ;;  %s249_s30 = sshll.u32 %s403_s29, 4  ;;  %s250_s30 = int_to_ptr.vmem [resolvable:$true] %s249_s30 }
   0x8   :  { %v346_v18 = vpack.c.bf16 %v30_v17, %v29_v16  ;;  %v32_v20 = vld [vmem:[%s546_s1 + $0x48] sm:$0xff]  ;;  %v40_v21 = vld [vmem:[%s548_s3] sm:$0xff]  ;;  %v33_v23 = vld [vmem:[%s546_s1 + $0x50] sm:$0xff]  ;;  %v189_v35 = vand.u32 127, %v188_v34  ;;  %p380_p1 = scmp.lt.s32.totalorder %s250_s30, %s250_s30 }
   0x9   :  { %v350_v22 = vpack.c.bf16 %v32_v20, %v31_v19  ;;  %v34_v24 = vld [vmem:[%s546_s1 + $0x58] sm:$0xff]  ;;  %v35_v26 = vld [vmem:[%s546_s1 + $0x60] sm:$0xff]  ;;  %v36_v27 = vld [vmem:[%s546_s1 + $0x68] sm:$0xff] }
   0xa   :  { %v354_v25 = vpack.c.bf16 %v34_v24, %v33_v23  ;;  %v358_v28 = vpack.c.bf16 %v36_v27, %v35_v26  ;;  %v37_v29 = vld [vmem:[%s546_s1 + $0x70] sm:$0xff]  ;;  %v38_v30 = vld [vmem:[%s546_s1 + $0x78] sm:$0xff]  ;;  %v274_v39 = vld [vmem:[%s547_s2] ss:$0 sm:$0xff] }
   0xb   :  { %v362_v31 = vpack.c.bf16 %v38_v30, %v37_v29 }
   0xc   :  { %340 = vmatpush3.bf16.xpose.msk.msra.mxu0 %vm442_vm1, %v338_v11 }
   0xd   :  { %341 = vmatprep.subr.bf16.mxu0 %v399_v2 }
  0x14   :  { %344 = vmatpush3.bf16.xpose.msk.msra.mxu0 %vm442_vm1, %v342_v15 }
  0x15   :  { %345 = vmatprep.subr.bf16.mxu0 %v399_v2 }
  0x1c   :  { %348 = vmatpush3.bf16.xpose.msk.msra.mxu0 %vm442_vm1, %v346_v18 }
  0x1d   :  { %349 = vmatprep.subr.bf16.mxu0 %v399_v2  ;;  %193 = vperm.xlu0 %370, %v40_v21  }
  0x24   :  { %352 = vmatpush3.bf16.xpose.msk.msra.mxu0 %vm442_vm1, %v350_v22 }
  0x25   :  { %353 = vmatprep.subr.bf16.mxu0 %v399_v2 }
  0x2c   :  { %356 = vmatpush3.bf16.xpose.msk.msra.mxu0 %vm442_vm1, %v354_v25 }
  0x2d   :  { %357 = vmatprep.subr.bf16.mxu0 %v399_v2 }
  0x34   :  { %360 = vmatpush3.bf16.xpose.msk.msra.mxu0 %vm442_vm1, %v358_v28 }
  0x35   :  { %361 = vmatprep.subr.bf16.mxu0 %v399_v2 }
  0x3c   :  { %364 = vmatpush3.bf16.xpose.msk.msra.mxu0 %vm442_vm1, %v362_v31 }
  0x43   :  { %331 = vmatmul.mubr.msk.f32.vlgmr.msra.gmra.mrb[0].mxu0 %vm43_vm0, %v22_v9 }
  0x94   :  { %v513_v32 = vpop.xlane.xlu0 %45 }
  0x95   :  { %v54_v33 = vmax.f32 %v513_v32, 1e-24  ;;  %vm49_vm8 = vcmp.eq.f32.partialorder %v513_v32, inf  ;;  %v52_v14 = vand.u32 2147483648, %v513_v32  ;;  %vm51_vm9 = vcmp.eq.f32.partialorder %v513_v32, 0.0 }
  0x97   :  { %371 = vrsqrt.f32 %v54_v33 }
  0x98   :  { %373 = vrsqrt.f32 %v513_v32 }
  0x9c   :  { %v194_v37 = vpop.permute.xlu0 %193 }
  0x9d   :  { %vm195_vm3 = vcmp.eq.s32.totalorder %v189_v35, %v194_v37 }
  0x9e   :  { %v276_v43 = vsel %vm195_vm3, 1.0, %v401_v5 }
  0xa1   :  { %v372_v36 = vpop.eup %371 }
  0xa2   :  { %v374_v9 = vpop.eup %373 }
  0xa3   :  { %v48_v12 = vmul.f32 %v374_v9, %v513_v32 }
  0xa5   :  { %v50_v15 = vsel %vm49_vm8, %v513_v32, %v48_v12 }
  0xa6   :  { %v53_v18 = vsel %vm51_vm9, %v52_v14, %v50_v15 }
 0x116   :  { %v173_v38 = vpop.f32.mrb[0].mxu0 }
 0x117   :  { %v177_v40 = vmul.f32 %v372_v36, %v173_v38  ;;  %v332_v41 = vpop.f32.mrb[1].mxu0 }
 0x119   :  { %v184_v42 = vmul.f32 %v274_v39, %v177_v40 }
 0x11b   :  { %v275_v44 = vclamps-f32 %v184_v42, 1.0 }
 0x11d   :  { %v198_v45 = vmul.f32 %v276_v43, %v275_v44 }
 0x11f   :  { %199 = vadd.xlane.f32.xlu1 %v198_v45 }
 0x1ac   :  { %v200_v46 = vpop.xlane.xlu1 %199 }
 0x1ad   :  { %v201_v47 = vmul.f32 %v200_v46, %v200_v46  ;;  %vm206_vm4 = vcmp.le.f32.partialorder %v200_v46, 0.70710677  ;;  %vm212_vm5 = vcmp.le.f32.partialorder %v200_v46, 1.7948966e-09  ;;  %vm219_vm6 = vcmp.le.f32.partialorder %v200_v46, -0.70710677 }
 0x1ae   :  { %v277_v48 = vsel %vm206_vm4, 1.0, %v401_v5  ;;  %v278_v49 = vsel %vm212_vm5, 1.0, %v401_v5  ;;  %v279_v50 = vsel %vm219_vm6, 1.0, %v401_v5  ;;  %vm226_vm7 = vcmp.le.f32.partialorder %v200_v46, -1.0 }
 0x1af   :  { %v202_v51 = vmul.f32 8.0, %v201_v47  ;;  %v210_v52 = vmul.f32 2.0, %v277_v48  ;;  %v215_v53 = vadd.f32 %v278_v49, %v277_v48  ;;  %v216_v54 = vmul.f32 2.0, %v278_v49 }
 0x1b0   :  { %v223_v55 = vmul.f32 2.0, %v279_v50  ;;  %v280_v56 = vsel %vm226_vm7, 1.0, %v401_v5  ;;  %v237_v5 = vstv %s549_s4  ;;  %s375_s4 = scalar_lea.vmem %s250_s30, 128 }
 0x1b1   :  { %v203_v57 = vmul.f32 %v202_v51, %v201_v47  ;;  %v211_v58 = vsub.f32 1.0, %v210_v52  ;;  %v217_v59 = vsub.f32 1.0, %v216_v54  ;;  %v222_v60 = vadd.f32 %v279_v50, %v215_v53  ;;  %p376_p0 = scmp.ne.s32.totalorder %s250_s30, %s375_s4  ;;  %p381_p2 = scmp.lt.s32.totalorder %s375_s4, %s375_s4 }
 0x1b2   :  { %v230_v61 = vmul.f32 2.0, %v280_v56  ;;  %v224_v0 = vsub.f32 1.0, %v223_v55 }
 0x1b3   :  { %v204_v62 = vsub.f32 %v203_v57, %v202_v51  ;;  %v218_v63 = vmul.f32 %v217_v59, %v211_v58  ;;  %v229_v2 = vadd.f32 %v280_v56, %v222_v60  ;;  %p382_p3 = por %p381_p2, %p380_p1 }
 0x1b4   :  { %v231_v3 = vsub.f32 1.0, %v230_v61 }
 0x1b5   :  { %v225_v1 = vmul.f32 %v224_v0, %v218_v63  ;;  %v205_v4 = vadd.f32 1.0, %v204_v62  ;;  %v234_v8 = vmul.f32 2.0, %v229_v2  ;;  %p383_p4 = pnand %p382_p3, %p376_p0 }
 0x1b7   :  { %v232_v6 = vmul.f32 %v231_v3, %v225_v1 }
 0x1b9   :  { %v233_v7 = vmul.f32 %v232_v6, %v205_v4 }
 0x1bb   :  { %v235_v10 = vsub.f32 %v233_v7, %v234_v8 }
 0x1bd   :  { %v236_v11 = vsub.f32 %v235_v10, %v200_v46 }
 0x1bf   :  { %v238_v13 = vmul.f32 %v237_v5, %v236_v11 }
 0x1c1   :  { %v239_v16 = vmul.f32 %v276_v43, %v238_v13 }
 0x1c3   :  { %v240_v17 = vadd.f32 %v275_v44, %v239_v16 }
 0x1c5   :  { %v241_v19 = vmul.f32 %v240_v17, %v53_v18 }
 0x1c7   :  { %242 = vst [vmem:[#allocation3] sm:$0xff] %v241_v19 }
 0x1c8   :  { %386 = shalt.err (!%p383_p4)
}
 0x1c9   :  { %s387_s7 = scalar_lea.hbm %s550_s5, 128 }
 0x1ca   :  { %p388_p5 = scmp.ne.s32.totalorder %s550_s5, %s387_s7  ;;  %p391_p6 = scmp.lt.u32.totalorder %s387_s7, %s550_s5 }
 0x1cc   :  { %p393_p7 = pnand %p391_p6, %p388_p5 }
 0x1ce   :  { %396 = shalt.err (!%p393_p7)
}
 0x1cf   :  { %252 = dma.vmem_to_hbm [thread:$0]  %s250_s30, 128, %s550_s5, [#allocation4]  }
 0x1d0   :  { %397 = dma.done.wait [#allocation4], 128  }
 0x1d1   :  { %398 = vsyncadd [#allocation4], 4294967168 }
 0x1d2   :  { %256 = vsyncpa [#allocation4], 1 }

</bundles_post_ra>
